<compile_context>
chip_gen: v7x
topology: tpu7x:2x2x1
jax: 0.10.0
libtpu: 0.0.40
codegen_flags: <defaults>
</compile_context>

<pallas_src>
import numpy as np
import jax
import jax.numpy as jnp
from jax.experimental import pallas as pl
from jax.experimental.pallas import tpu as pltpu


# ---- module configuration (matches PositionalEncoding defaults) -------------
NUM_ENC = 6
INPUT_DIM = 3
INCLUDE_INPUT = True
LOG_SAMPLING = True
NORMALIZE = False

if LOG_SAMPLING:
    FREQ_BANDS = 2.0 ** np.linspace(0.0, NUM_ENC - 1, NUM_ENC)
else:
    FREQ_BANDS = np.linspace(2.0 ** 0.0, 2.0 ** (NUM_ENC - 1), NUM_ENC)
NORMALIZATION = (1.0 / FREQ_BANDS) if NORMALIZE else None

N_CHUNKS = (1 if INCLUDE_INPUT else 0) + 2 * NUM_ENC      # 13 chunks of width INPUT_DIM
OUT_DIM = INPUT_DIM * N_CHUNKS                            # 39

# Re-anchor the double-angle recurrence every ANCHOR_EVERY bands (direct sin/cos);
# bands in between use sin(2a)=2sc, cos(2a)=c^2-s^2 (valid since log_sampling gives
# freqs 2**i).  ANCHOR_EVERY=3 means at most 2 doubling steps off an anchor (~1e-6
# absolute error) while cutting transcendental work to 1/3.
ANCHOR_EVERY = 3

# Cap on the double-buffered VMEM working set (input + output blocks).  Leaves
# headroom under v7x's 64 MiB physical VMEM; v5e/v6e have 128 MiB.
_VMEM_BUDGET = 40 << 20


# ---- kernel ------------------------------------------------------------------
def _pe_kernel(x_ref, o_ref):
    # x_ref block: (INPUT_DIM, TILE)            -- lane-dense along N
    # o_ref block: (N_CHUNKS, INPUT_DIM, TILE)  -- each chunk is its own leading slice,
    #   so every store lands at sublane offset 0: no misaligned / tile-crossing stores
    #   and no sublane rotates.  (Trade-off: each (3, TILE) slice pads 3->8 sublanes in
    #   VMEM, accounted for in the wrapper's tile sizing.)
    x = x_ref[...]  # f32 compute
    base = 0
    if INCLUDE_INPUT:
        o_ref[0] = x.astype(o_ref.dtype)
        base = 1
    s = c = None
    for i in range(NUM_ENC):  # static Python loop, unrolled at trace time
        if (not LOG_SAMPLING) or (i % ANCHOR_EVERY == 0) or s is None:
            xf = x * float(FREQ_BANDS[i])
            s = jnp.sin(xf)   # EUP
            c = jnp.cos(xf)   # EUP
        else:
            # frequency doubles each band: exact double-angle identities (VPU only)
            s, c = 2.0 * s * c, c * c - s * s
        if NORMALIZATION is not None:
            sw = float(NORMALIZATION[i]) * s
            cw = float(NORMALIZATION[i]) * c
        else:
            sw, cw = s, c
        o_ref[base + 2 * i] = sw.astype(o_ref.dtype)
        o_ref[base + 2 * i + 1] = cw.astype(o_ref.dtype)


# ---- wrapper -----------------------------------------------------------------
def _round_up(a, m):
    return (a + m - 1) // m * m


def _vmem_need_bytes(tile, out_itemsize):
    # Double-buffered input + output blocks.  Each (INPUT_DIM, tile) output slice pads
    # its sublane dim 3 -> 8 in VMEM.
    in_b = INPUT_DIM * tile * 4
    out_b = N_CHUNKS * _round_up(INPUT_DIM, 8) * tile * out_itemsize
    return 2 * (in_b + out_b)


def positional_encoding(x, *, tile_n=32768, out_dtype=None, channels_last=True):
    """NeRF positional encoding.

    x: (..., INPUT_DIM)

    channels_last=True  -> (..., OUT_DIM), exactly like the PyTorch module.  NOTE: this
        costs one extra full read+write pass over the 13x-sized output (the transpose).
    channels_last=False -> (OUT_DIM, N) channel-first, no transpose pass.  Row order is
        [x, sin(f0 x), cos(f0 x), ..., cos(f5 x)] over the flattened leading dims.
        Recommended when the consumer can take the features K-major.

    out_dtype: e.g. jnp.bfloat16 nearly halves HBM traffic (output writes are 13/14 of
        the bytes); default keeps x.dtype (float32) to match the PyTorch module.
    """
    *lead, d = x.shape
    assert d == INPUT_DIM, f"expected last dim {INPUT_DIM}, got {d}"
    out_dtype = x.dtype if out_dtype is None else out_dtype
    out_itemsize = int(np.dtype(out_dtype).itemsize)
    n = int(np.prod(lead)) if lead else 1

    # Lane-dense compute layout: (D, N).  This transpose touches only the *input*
    # (12 B/point, ~1/13 of the output bytes), so it is genuinely cheap.
    xt = x.reshape(n, d).astype(jnp.float32).T  # (D, N)

    n128 = _round_up(max(n, 1), 128)

    # Tile choice:
    #  * cap so the double-buffered working set stays under _VMEM_BUDGET,
    #  * >= 2 grid steps when possible so ("parallel",) shards across v7x's 2 TCs,
    #  * near-equal 128-multiple tiles so ragged-tail padding (wasted compute/writes)
    #    is bounded by ~127*steps points instead of up to a whole tile.
    max_tile = max(128, _round_up(int(tile_n), 128))
    while _vmem_need_bytes(max_tile, out_itemsize) > _VMEM_BUDGET and max_tile > 128:
        max_tile = max(128, _round_up(max_tile // 2, 128))
    min_steps = 2 if n128 >= 256 else 1
    steps = max(pl.cdiv(n128, max_tile), min_steps)
    tile = _round_up(pl.cdiv(n128, steps), 128)
    n_total = steps * tile
    if n_total != n:
        xt = jnp.pad(xt, ((0, 0), (0, n_total - n)))  # input-sized copy only

    n_direct = (-(-NUM_ENC // ANCHOR_EVERY)) if LOG_SAMPLING else NUM_ENC
    elems = n_total * INPUT_DIM
    cost = pl.CostEstimate(
        flops=(n_direct + 6 * (NUM_ENC - n_direct) + 2 * NUM_ENC) * elems,
        transcendentals=2 * n_direct * elems,
        bytes_accessed=4 * elems + N_CHUNKS * elems * out_itemsize,
    )

    vmem_limit = _vmem_need_bytes(tile, out_itemsize) + (8 << 20)  # headroom for spills
    vmem_limit = int(min(max(vmem_limit, 32 << 20), 56 << 20))

    out = pl.pallas_call(
        _pe_kernel,
        out_shape=jax.ShapeDtypeStruct((N_CHUNKS, INPUT_DIM, n_total), out_dtype),
        grid=(steps,),
        in_specs=[pl.BlockSpec((INPUT_DIM, tile), lambda i: (0, i))],
        out_specs=pl.BlockSpec((N_CHUNKS, INPUT_DIM, tile), lambda i: (0, 0, i)),
        compiler_params=pltpu.CompilerParams(
            dimension_semantics=("parallel",),   # shards grid across v7x's 2 TCs
            vmem_limit_bytes=vmem_limit),
        cost_estimate=cost,
    )(xt)  # (N_CHUNKS, INPUT_DIM, n_total)

    if channels_last:
        # PyTorch-exact layout.  This is a full extra pass over the 13x-sized output;
        # prefer channels_last=False (or fuse the PE into the consumer matmul) when
        # the downstream op can consume channel-first features.
        res = jnp.transpose(out, (2, 0, 1)).reshape(n_total, OUT_DIM)[:n]
        return res.reshape(*lead, OUT_DIM)
    # Channel-first: (13,3,N) -> (39,N) is a free contiguous reshape; slicing the
    # padded tail (if any) is the only extra work.
    res = out.reshape(OUT_DIM, n_total)
    return res if n_total == n else res[:, :n]


# ---- pure-JAX reference (for correctness check) --------------------------------
def positional_encoding_ref(x):
    parts = [x] if INCLUDE_INPUT else []
    for i in range(NUM_ENC):
        freq = float(FREQ_BANDS[i])
        s = jnp.sin(x * freq)
        c = jnp.cos(x * freq)
        if NORMALIZATION is not None:
            s = float(NORMALIZATION[i]) * s
            c = float(NORMALIZATION[i]) * c
        parts += [s, c]
    return jnp.concatenate(parts, axis=-1) if len(parts) > 1 else parts[0]


if __name__ == "__main__":
    key = jax.random.PRNGKey(0)
    # small example: batch=2, seq=8, input_dim=3 -> output (2, 8, 39).
    # Coordinates in [-1, 1], as typically fed to NeRF positional encoding.
    x = jax.random.uniform(key, (2, 8, INPUT_DIM), dtype=jnp.float32,
                           minval=-1.0, maxval=1.0)
    ref = positional_encoding_ref(x)

    # 1) PyTorch-exact path: channels-last, float32.
    out = jax.block_until_ready(positional_encoding(x))
    assert out.shape == (2, 8, OUT_DIM), out.shape
    # atol slightly above f32 eps: recurrence-derived bands take <=2 double-angle steps
    # off a directly evaluated anchor (deviation vs. direct evaluation is a few 1e-6).
    np.testing.assert_allclose(np.asarray(out), np.asarray(ref), rtol=1e-5, atol=2e-5)

    # 2) Recommended fast path: channel-first output (no output transpose pass).
    out_cf = jax.block_until_ready(positional_encoding(x, channels_last=False))
    assert out_cf.shape == (OUT_DIM, 2 * 8), out_cf.shape
    np.testing.assert_allclose(np.asarray(out_cf),
                               np.asarray(ref).reshape(-1, OUT_DIM).T,
                               rtol=1e-5, atol=2e-5)

    # 3) Recommended fast path: bf16 output (halves HBM write traffic).
    out_bf16 = jax.block_until_ready(positional_encoding(x, out_dtype=jnp.bfloat16))
    np.testing.assert_allclose(np.asarray(out_bf16).astype(np.float32),
                               np.asarray(ref), rtol=2e-2, atol=2e-2)

    print("KERNEL_OK")
</pallas_src>

<mosaic_0001>
module attributes {stable_mosaic.version = 11 : i64} {
  func.func @_pe_kernel(%arg0: i32, %arg1: memref<3x128xf32, #tpu.memory_space<vmem>>, %arg2: memref<13x3x128xf32, #tpu.memory_space<vmem>>) attributes {dimension_semantics = [#tpu.dimension_semantics<parallel>], iteration_bounds = array<i64: 1>, scalar_prefetch = 0 : i64, scratch_operands = 0 : i64, tpu.core_type = #tpu.core_type<tc>, window_params = [{transform_indices = @transform_0, window_bounds = array<i64: 3, 128>}, {transform_indices = @transform_1, window_bounds = array<i64: 13, 3, 128>}]} {
    %c0 = arith.constant 0 : index
    %c0_0 = arith.constant 0 : index
    %0 = vector.load %arg1[%c0, %c0_0] : memref<3x128xf32, #tpu.memory_space<vmem>>, vector<3x128xf32>
    %c0_1 = arith.constant 0 : index
    %c0_2 = arith.constant 0 : index
    %c0_3 = arith.constant 0 : index
    %1 = vector.load %arg2[%c0_1, %c0_2, %c0_3] : memref<13x3x128xf32, #tpu.memory_space<vmem>>, vector<1x3x128xf32>
    %2 = vector.shape_cast %1 : vector<1x3x128xf32> to vector<3x128xf32>
    %3 = vector.shape_cast %0 : vector<3x128xf32> to vector<1x3x128xf32>
    tpu.vector_store %arg2[%c0_1, %c0_2, %c0_3], %3 {strides = array<i32>} : memref<13x3x128xf32, #tpu.memory_space<vmem>>, vector<1x3x128xf32>,
    %cst = arith.constant 1.000000e+00 : f32
    %4 = vector.broadcast %cst : f32 to vector<3x128xf32>
    %5 = arith.mulf %0, %4 : vector<3x128xf32>
    %6 = math.sin %5 : vector<3x128xf32>
    %7 = math.cos %5 : vector<3x128xf32>
    %c1 = arith.constant 1 : index
    %c0_4 = arith.constant 0 : index
    %c0_5 = arith.constant 0 : index
    %8 = vector.load %arg2[%c1, %c0_4, %c0_5] : memref<13x3x128xf32, #tpu.memory_space<vmem>>, vector<1x3x128xf32>
    %9 = vector.shape_cast %8 : vector<1x3x128xf32> to vector<3x128xf32>
    %10 = vector.shape_cast %6 : vector<3x128xf32> to vector<1x3x128xf32>
    tpu.vector_store %arg2[%c1, %c0_4, %c0_5], %10 {strides = array<i32>} : memref<13x3x128xf32, #tpu.memory_space<vmem>>, vector<1x3x128xf32>,
    %c2 = arith.constant 2 : index
    %c0_6 = arith.constant 0 : index
    %c0_7 = arith.constant 0 : index
    %11 = vector.load %arg2[%c2, %c0_6, %c0_7] : memref<13x3x128xf32, #tpu.memory_space<vmem>>, vector<1x3x128xf32>
    %12 = vector.shape_cast %11 : vector<1x3x128xf32> to vector<3x128xf32>
    %13 = vector.shape_cast %7 : vector<3x128xf32> to vector<1x3x128xf32>
    tpu.vector_store %arg2[%c2, %c0_6, %c0_7], %13 {strides = array<i32>} : memref<13x3x128xf32, #tpu.memory_space<vmem>>, vector<1x3x128xf32>,
    %cst_8 = arith.constant 2.000000e+00 : f32
    %14 = vector.broadcast %cst_8 : f32 to vector<3x128xf32>
    %15 = arith.mulf %14, %6 : vector<3x128xf32>
    %16 = arith.mulf %15, %7 : vector<3x128xf32>
    %17 = arith.mulf %7, %7 : vector<3x128xf32>
    %18 = arith.mulf %6, %6 : vector<3x128xf32>
    %19 = arith.subf %17, %18 : vector<3x128xf32>
    %c3 = arith.constant 3 : index
    %c0_9 = arith.constant 0 : index
    %c0_10 = arith.constant 0 : index
    %20 = vector.load %arg2[%c3, %c0_9, %c0_10] : memref<13x3x128xf32, #tpu.memory_space<vmem>>, vector<1x3x128xf32>
    %21 = vector.shape_cast %20 : vector<1x3x128xf32> to vector<3x128xf32>
    %22 = vector.shape_cast %16 : vector<3x128xf32> to vector<1x3x128xf32>
    tpu.vector_store %arg2[%c3, %c0_9, %c0_10], %22 {strides = array<i32>} : memref<13x3x128xf32, #tpu.memory_space<vmem>>, vector<1x3x128xf32>,
    %c4 = arith.constant 4 : index
    %c0_11 = arith.constant 0 : index
    %c0_12 = arith.constant 0 : index
    %23 = vector.load %arg2[%c4, %c0_11, %c0_12] : memref<13x3x128xf32, #tpu.memory_space<vmem>>, vector<1x3x128xf32>
    %24 = vector.shape_cast %23 : vector<1x3x128xf32> to vector<3x128xf32>
    %25 = vector.shape_cast %19 : vector<3x128xf32> to vector<1x3x128xf32>
    tpu.vector_store %arg2[%c4, %c0_11, %c0_12], %25 {strides = array<i32>} : memref<13x3x128xf32, #tpu.memory_space<vmem>>, vector<1x3x128xf32>,
    %cst_13 = arith.constant 2.000000e+00 : f32
    %26 = vector.broadcast %cst_13 : f32 to vector<3x128xf32>
    %27 = arith.mulf %26, %16 : vector<3x128xf32>
    %28 = arith.mulf %27, %19 : vector<3x128xf32>
    %29 = arith.mulf %19, %19 : vector<3x128xf32>
    %30 = arith.mulf %16, %16 : vector<3x128xf32>
    %31 = arith.subf %29, %30 : vector<3x128xf32>
    %c5 = arith.constant 5 : index
    %c0_14 = arith.constant 0 : index
    %c0_15 = arith.constant 0 : index
    %32 = vector.load %arg2[%c5, %c0_14, %c0_15] : memref<13x3x128xf32, #tpu.memory_space<vmem>>, vector<1x3x128xf32>
    %33 = vector.shape_cast %32 : vector<1x3x128xf32> to vector<3x128xf32>
    %34 = vector.shape_cast %28 : vector<3x128xf32> to vector<1x3x128xf32>
    tpu.vector_store %arg2[%c5, %c0_14, %c0_15], %34 {strides = array<i32>} : memref<13x3x128xf32, #tpu.memory_space<vmem>>, vector<1x3x128xf32>,
    %c6 = arith.constant 6 : index
    %c0_16 = arith.constant 0 : index
    %c0_17 = arith.constant 0 : index
    %35 = vector.load %arg2[%c6, %c0_16, %c0_17] : memref<13x3x128xf32, #tpu.memory_space<vmem>>, vector<1x3x128xf32>
    %36 = vector.shape_cast %35 : vector<1x3x128xf32> to vector<3x128xf32>
    %37 = vector.shape_cast %31 : vector<3x128xf32> to vector<1x3x128xf32>
    tpu.vector_store %arg2[%c6, %c0_16, %c0_17], %37 {strides = array<i32>} : memref<13x3x128xf32, #tpu.memory_space<vmem>>, vector<1x3x128xf32>,
    %cst_18 = arith.constant 8.000000e+00 : f32
    %38 = vector.broadcast %cst_18 : f32 to vector<3x128xf32>
    %39 = arith.mulf %0, %38 : vector<3x128xf32>
    %40 = math.sin %39 : vector<3x128xf32>
    %41 = math.cos %39 : vector<3x128xf32>
    %c7 = arith.constant 7 : index
    %c0_19 = arith.constant 0 : index
    %c0_20 = arith.constant 0 : index
    %42 = vector.load %arg2[%c7, %c0_19, %c0_20] : memref<13x3x128xf32, #tpu.memory_space<vmem>>, vector<1x3x128xf32>
    %43 = vector.shape_cast %42 : vector<1x3x128xf32> to vector<3x128xf32>
    %44 = vector.shape_cast %40 : vector<3x128xf32> to vector<1x3x128xf32>
    tpu.vector_store %arg2[%c7, %c0_19, %c0_20], %44 {strides = array<i32>} : memref<13x3x128xf32, #tpu.memory_space<vmem>>, vector<1x3x128xf32>,
    %c8 = arith.constant 8 : index
    %c0_21 = arith.constant 0 : index
    %c0_22 = arith.constant 0 : index
    %45 = vector.load %arg2[%c8, %c0_21, %c0_22] : memref<13x3x128xf32, #tpu.memory_space<vmem>>, vector<1x3x128xf32>
    %46 = vector.shape_cast %45 : vector<1x3x128xf32> to vector<3x128xf32>
    %47 = vector.shape_cast %41 : vector<3x128xf32> to vector<1x3x128xf32>
    tpu.vector_store %arg2[%c8, %c0_21, %c0_22], %47 {strides = array<i32>} : memref<13x3x128xf32, #tpu.memory_space<vmem>>, vector<1x3x128xf32>,
    %cst_23 = arith.constant 2.000000e+00 : f32
    %48 = vector.broadcast %cst_23 : f32 to vector<3x128xf32>
    %49 = arith.mulf %48, %40 : vector<3x128xf32>
    %50 = arith.mulf %49, %41 : vector<3x128xf32>
    %51 = arith.mulf %41, %41 : vector<3x128xf32>
    %52 = arith.mulf %40, %40 : vector<3x128xf32>
    %53 = arith.subf %51, %52 : vector<3x128xf32>
    %c9 = arith.constant 9 : index
    %c0_24 = arith.constant 0 : index
    %c0_25 = arith.constant 0 : index
    %54 = vector.load %arg2[%c9, %c0_24, %c0_25] : memref<13x3x128xf32, #tpu.memory_space<vmem>>, vector<1x3x128xf32>
    %55 = vector.shape_cast %54 : vector<1x3x128xf32> to vector<3x128xf32>
    %56 = vector.shape_cast %50 : vector<3x128xf32> to vector<1x3x128xf32>
    tpu.vector_store %arg2[%c9, %c0_24, %c0_25], %56 {strides = array<i32>} : memref<13x3x128xf32, #tpu.memory_space<vmem>>, vector<1x3x128xf32>,
    %c10 = arith.constant 10 : index
    %c0_26 = arith.constant 0 : index
    %c0_27 = arith.constant 0 : index
    %57 = vector.load %arg2[%c10, %c0_26, %c0_27] : memref<13x3x128xf32, #tpu.memory_space<vmem>>, vector<1x3x128xf32>
    %58 = vector.shape_cast %57 : vector<1x3x128xf32> to vector<3x128xf32>
    %59 = vector.shape_cast %53 : vector<3x128xf32> to vector<1x3x128xf32>
    tpu.vector_store %arg2[%c10, %c0_26, %c0_27], %59 {strides = array<i32>} : memref<13x3x128xf32, #tpu.memory_space<vmem>>, vector<1x3x128xf32>,
    %cst_28 = arith.constant 2.000000e+00 : f32
    %60 = vector.broadcast %cst_28 : f32 to vector<3x128xf32>
    %61 = arith.mulf %60, %50 : vector<3x128xf32>
    %62 = arith.mulf %61, %53 : vector<3x128xf32>
    %63 = arith.mulf %53, %53 : vector<3x128xf32>
    %64 = arith.mulf %50, %50 : vector<3x128xf32>
    %65 = arith.subf %63, %64 : vector<3x128xf32>
    %c11 = arith.constant 11 : index
    %c0_29 = arith.constant 0 : index
    %c0_30 = arith.constant 0 : index
    %66 = vector.load %arg2[%c11, %c0_29, %c0_30] : memref<13x3x128xf32, #tpu.memory_space<vmem>>, vector<1x3x128xf32>
    %67 = vector.shape_cast %66 : vector<1x3x128xf32> to vector<3x128xf32>
    %68 = vector.shape_cast %62 : vector<3x128xf32> to vector<1x3x128xf32>
    tpu.vector_store %arg2[%c11, %c0_29, %c0_30], %68 {strides = array<i32>} : memref<13x3x128xf32, #tpu.memory_space<vmem>>, vector<1x3x128xf32>,
    %c12 = arith.constant 12 : index
    %c0_31 = arith.constant 0 : index
    %c0_32 = arith.constant 0 : index
    %69 = vector.load %arg2[%c12, %c0_31, %c0_32] : memref<13x3x128xf32, #tpu.memory_space<vmem>>, vector<1x3x128xf32>
    %70 = vector.shape_cast %69 : vector<1x3x128xf32> to vector<3x128xf32>
    %71 = vector.shape_cast %65 : vector<3x128xf32> to vector<1x3x128xf32>
    tpu.vector_store %arg2[%c12, %c0_31, %c0_32], %71 {strides = array<i32>} : memref<13x3x128xf32, #tpu.memory_space<vmem>>, vector<1x3x128xf32>,
    return
  }
  func.func @transform_0(%arg0: i32) -> (i32, i32) {
    %c0_i32 = arith.constant 0 : i32
    %c0_i32_0 = arith.constant 0 : i32
    return %c0_i32, %arg0 : i32, i32
  }
  func.func @transform_1(%arg0: i32) -> (i32, i32, i32) {
    %c0_i32 = arith.constant 0 : i32
    %c0_i32_0 = arith.constant 0 : i32
    %c0_i32_1 = arith.constant 0 : i32
    return %c0_i32, %c0_i32_0, %arg0 : i32, i32, i32
  }
}

</mosaic_0001>

<bundles_post_ra>
// kernel: tpu_custom_call.1
= control target key start
LH: loop header
LB: loop body
LE: loop exit
PB: predicated region body
PF: predicated region fallthrough
CT: control target
= control target key end

     0   :  { %6 = vsyncpa [#allocation3], 0  ;;  %s561_s6 = smov [#allocation2]   ;;  %s700_s0 = inlined_call_operand.hbm [shape: f32[3,128], index: 0, kind: input, shape index: {}]   ;;  %s701_s1 = inlined_call_operand.vmem [shape: f32[13,3,128], index: 1, kind: output, shape index: {}]  }
   0x1   :  { %s13_s7 = sshll.u32 %s561_s6, 4  ;;  %s537_s10 = scalar_lea.hbm %s700_s0, 64  ;;  %s14_s7 = int_to_ptr.vmem [resolvable:$true] %s13_s7 }
   0x2   :  { %p538_p0 = scmp.ne.s32.totalorder %s700_s0, %s537_s10  ;;  %p541_p1 = scmp.lt.u32.totalorder %s537_s10, %s700_s0 }
   0x4   :  { %p543_p2 = pnand %p541_p1, %p538_p0 }
   0x6   :  { %546 = shalt.err (!%p543_p2)
}
   0x7   :  { %s547_s15 = scalar_lea.vmem %s14_s7, 64  ;;  %p552_p4 = scmp.lt.s32.totalorder %s14_s7, %s14_s7 }
   0x8   :  { %p548_p3 = scmp.ne.s32.totalorder %s14_s7, %s547_s15  ;;  %p553_p5 = scmp.lt.s32.totalorder %s547_s15, %s547_s15 }
   0xa   :  { %p554_p6 = por %p553_p5, %p552_p4 }
   0xc   :  { %p555_p7 = pnand %p554_p6, %p548_p3 }
   0xe   :  { %558 = shalt.err (!%p555_p7)
}
   0xf   :  { %16 = dma.hbm_to_vmem [thread:$0]  %s700_s0, 64, %s14_s7, [#allocation3]  }
  0x10   :  { %559 = dma.done.wait [#allocation3], 64  }
  0x11   :  { %560 = vsyncadd [#allocation3], 4294967232  ;;  %v590_v0 = vld [vmem:[#allocation2] sm:$0x7]  ;;  %v562_v21 = vmov 683565275  }
  0x12   :  { %21 = vst [vmem:[%s701_s1] sm:$0x7] %v590_v0  ;;  %v25_v1 = vand.u32 2139095040, %v590_v0  ;;  %v22_v2 = vand.u32 2147483647, %v590_v0  ;;  %v599_v3 = vmul.f32 8.0, %v590_v0  ;;  %vm24_vm14 = vcmp.lt.s32.totalorder %v590_v0, 0 }
  0x13   :  { %v563_v23 = vmov 2475754826   ;;  %v564_v25 = vmov 2131351028   ;;  %v565_v27 = vmov 2102212464  }
  0x14   :  { %v26_v4 = vshrl.u32 %v25_v1, 23  ;;  %v29_v5 = vand.u32 8388607, %v22_v2  ;;  %v252_v6 = vand.u32 2147483647, %v599_v3  ;;  %v255_v7 = vand.u32 2139095040, %v599_v3 }
  0x15   :  { %v566_v29 = vmov 920167782   ;;  %v567_v36 = vmov 1326507024   ;;  %vm23_vm15 = vcmp.le.f32.partialorder %v22_v2, 0.7853982 }
  0x16   :  { %v486_v8 = vadd.s32 4294967169, %v26_v4  ;;  %v256_v9 = vshrl.u32 %v255_v7, 23  ;;  %v30_v11 = vor.u32 8388608, %v29_v5  ;;  %v607_v13 = vand.u32 8388607, %v252_v6 }
  0x18   :  { %v32_v10 = vadd.s32 1, %v486_v8  ;;  %v500_v12 = vadd.s32 4294967169, %v256_v9  ;;  %v609_v18 = vshll.u32 %v30_v11, 8  ;;  %v260_v19 = vor.u32 8388608, %v607_v13 }
  0x1a   :  { %vm33_vm0 = vcmp.gt.s32.totalorder %v32_v10, 0  ;;  %v262_v15 = vadd.s32 1, %v500_v12 }
  0x1b   :  { %v34_v14 = vsel %vm33_vm0, %v32_v10, 0  ;;  %vm254_vm0 = vcmp.lt.s32.totalorder %v599_v3, 0 }
  0x1c   :  { %v35_v16 = vshrl.u32 %v34_v14, 5  ;;  %v36_v17 = vand.u32 31, %v34_v14  ;;  %vm263_vm1 = vcmp.gt.s32.totalorder %v262_v15, 0 }
  0x1d   :  { %v264_v41 = vsel %vm263_vm1, %v262_v15, 0  ;;  %vm253_vm1 = vcmp.le.f32.partialorder %v252_v6, 0.7853982 }
  0x1e   :  { %v37_v20 = vsub.s32 32, %v36_v17  ;;  %v39_v22 = vshll.u32 %v562_v21, %v36_v17  ;;  %v42_v24 = vshll.u32 %v563_v23, %v36_v17  ;;  %v45_v26 = vshll.u32 %v564_v25, %v36_v17 }
  0x1f   :  { %v48_v28 = vshll.u32 %v565_v27, %v36_v17  ;;  %v51_v30 = vshll.u32 %v566_v29, %v36_v17  ;;  %vm54_vm2 = vcmp.lt.s32.totalorder %v35_v16, 1  ;;  %vm55_vm3 = vcmp.lt.s32.totalorder %v35_v16, 2 }
  0x20   :  { %v38_v31 = vshrl.u32 %v562_v21, %v37_v20  ;;  %v40_v32 = vshrl.u32 %v563_v23, %v37_v20  ;;  %v43_v33 = vshrl.u32 %v564_v25, %v37_v20  ;;  %v46_v34 = vshrl.u32 %v565_v27, %v37_v20 }
  0x21   :  { %v49_v35 = vshrl.u32 %v566_v29, %v37_v20  ;;  %v52_v37 = vshrl.u32 %v567_v36, %v37_v20  ;;  %vm56_vm4 = vcmp.lt.s32.totalorder %v35_v16, 3  ;;  %vm57_vm5 = vcmp.lt.s32.totalorder %v35_v16, 4 }
  0x22   :  { %v41_v38 = vor.u32 %v40_v32, %v39_v22  ;;  %v44_v39 = vor.u32 %v43_v33, %v42_v24  ;;  %v47_v40 = vor.u32 %v46_v34, %v45_v26  ;;  %v265_v44 = vshrl.u32 %v264_v41, 5 }
  0x23   :  { %v50_v42 = vor.u32 %v49_v35, %v48_v28  ;;  %v53_v43 = vor.u32 %v52_v37, %v51_v30  ;;  %v266_v45 = vand.u32 31, %v264_v41 }
  0x24   :  { %v58_v46 = vsel %vm54_vm2, %v38_v31, %v41_v38  ;;  %v59_v47 = vsel %vm57_vm5, %v47_v40, 2102212464  ;;  %v62_v48 = vsel %vm54_vm2, %v41_v38, %v44_v39  ;;  %v66_v49 = vsel %vm54_vm2, %v44_v39, %v47_v40 }
  0x25   :  { %v60_v50 = vsel %vm56_vm4, %v44_v39, %v59_v47  ;;  %v63_v51 = vsel %vm57_vm5, %v50_v42, 920167782  ;;  %v67_v52 = vsel %vm57_vm5, %v53_v43, 1326507024  ;;  %v267_v53 = vsub.s32 32, %v266_v45 }
  0x26   :  { %v61_v54 = vsel %vm55_vm3, %v58_v46, %v60_v50  ;;  %v64_v55 = vsel %vm56_vm4, %v47_v40, %v63_v51  ;;  %v68_v56 = vsel %vm56_vm4, %v50_v42, %v67_v52  ;;  %v269_v57 = vshll.u32 %v562_v21, %v266_v45 }
  0x27   :  { %v65_v58 = vsel %vm55_vm3, %v62_v48, %v64_v55  ;;  %v69_v59 = vsel %vm55_vm3, %v66_v49, %v68_v56  ;;  %v77_v60 = vmul.u32 %v609_v18, %v61_v54  ;;  %v268_v61 = vshrl.u32 %v562_v21, %v267_v53 }
  0x28   :  { %v624_v62 = vmul.u32.u64.low %v609_v18, %v69_v59  ;;  %v625_v63 = vmul.u32.u64.high %v609_v18, %v69_v59, %v624_v62  ;;  %v628_v1 = vmul.u32.u64.low %v609_v18, %v65_v58  ;;  %v629_v4 = vmul.u32.u64.high %v609_v18, %v65_v58, %v628_v1 }
  0x29   :  { %v270_v5 = vshrl.u32 %v563_v23, %v267_v53  ;;  %v272_v7 = vshll.u32 %v563_v23, %v266_v45  ;;  %v273_v8 = vshrl.u32 %v564_v25, %v267_v53  ;;  %v275_v9 = vshll.u32 %v564_v25, %v266_v45 }
  0x2a   :  { %v276_v10 = vshrl.u32 %v565_v27, %v267_v53  ;;  %v278_v11 = vshll.u32 %v565_v27, %v266_v45  ;;  %v279_v12 = vshrl.u32 %v566_v29, %v267_v53  ;;  %v281_v14 = vshll.u32 %v566_v29, %v266_v45 }
  0x2b   :  { %v271_v15 = vor.u32 %v270_v5, %v269_v57  ;;  %v274_v16 = vor.u32 %v273_v8, %v272_v7  ;;  %v282_v17 = vshrl.u32 %v567_v36, %v267_v53  ;;  %vm284_vm6 = vcmp.lt.s32.totalorder %v265_v44, 1 }
  0x2c   :  { %vm79_vm7 = vc.u32 %v625_v63, %v628_v1  ;;  %v80_v20 = vadd.s32 1, %v629_v4  ;;  %v277_v21 = vor.u32 %v276_v10, %v275_v9  ;;  %v300_v18 = vshll.u32 %v260_v19, 8 }
  0x2d   :  { %v280_v22 = vor.u32 %v279_v12, %v278_v11  ;;  %v283_v23 = vor.u32 %v282_v17, %v281_v14  ;;  %vm285_vm8 = vcmp.lt.s32.totalorder %v265_v44, 2  ;;  %vm286_vm9 = vcmp.lt.s32.totalorder %v265_v44, 3 }
  0x2e   :  { %v81_v24 = vsel %vm79_vm7, %v80_v20, %v629_v4  ;;  %vm287_vm10 = vcmp.lt.s32.totalorder %v265_v44, 4  ;;  %v288_v25 = vsel %vm284_vm6, %v268_v61, %v271_v15  ;;  %v292_v26 = vsel %vm284_vm6, %v271_v15, %v274_v16 }
  0x2f   :  { %v82_v27 = vadd.s32 %v81_v24, %v77_v60  ;;  %v289_v28 = vsel %vm287_vm10, %v277_v21, 2102212464  ;;  %v293_v29 = vsel %vm287_vm10, %v280_v22, 920167782  ;;  %v296_v30 = vsel %vm284_vm6, %v274_v16, %v277_v21 }
  0x30   :  { %v290_v31 = vsel %vm286_vm9, %v274_v16, %v289_v28  ;;  %v294_v32 = vsel %vm286_vm9, %v277_v21, %v293_v29  ;;  %v297_v13 = vsel %vm287_vm10, %v283_v23, 1326507024  ;;  %v78_v55 = vadd.s32 %v628_v1, %v625_v63 }
  0x31   :  { %v83_v19 = vadd.s32 536870912, %v82_v27  ;;  %v295_v33 = vsel %vm285_vm8, %v292_v26, %v294_v32  ;;  %v298_v34 = vsel %vm286_vm9, %v280_v22, %v297_v13  ;;  %v291_v35 = vsel %vm285_vm8, %v288_v25, %v290_v31 }
  0x32   :  { %v299_v36 = vsel %vm285_vm8, %v296_v30, %v298_v34  ;;  %v642_v37 = vmul.u32.u64.low %v300_v18, %v295_v33  ;;  %v643_v38 = vmul.u32.u64.high %v300_v18, %v295_v33, %v642_v37  ;;  %v307_v43 = vmul.u32 %v300_v18, %v291_v35 }
  0x33   :  { %v84_v39 = vshrl.u32 %v83_v19, 30  ;;  %v645_v40 = vmul.u32.u64.low %v300_v18, %v299_v36  ;;  %v646_v41 = vmul.u32.u64.high %v300_v18, %v299_v36, %v645_v40  ;;  %vm114_vm8 = vweird.f32 %v590_v0 }
  0x34   :  { %v310_v45 = vadd.s32 1, %v643_v38 }
  0x35   :  { %v85_v42 = vshll.u32 %v84_v39, 30  ;;  %vm309_vm11 = vc.u32 %v646_v41, %v642_v37  ;;  %v108_v15 = vsub.s32 4, %v84_v39  ;;  %v308_v63 = vadd.s32 %v642_v37, %v646_v41 }
  0x36   :  { %v311_v47 = vsel %vm309_vm11, %v310_v45, %v643_v38 }
  0x37   :  { %v86_v46 = vsub.s32 %v82_v27, %v85_v42  ;;  %v312_v49 = vadd.s32 %v311_v47, %v307_v43  ;;  %v109_v22 = vsel %vm24_vm14, %v108_v15, %v84_v39 }
  0x38   :  { %v111_v27 = vsel %vm23_vm15, 0, %v109_v22 }
  0x39   :  { %v88_v48 = vsub.s32 0, %v86_v46  ;;  %v313_v50 = vadd.s32 536870912, %v312_v49  ;;  %v115_v32 = vadd.s32 3, %v111_v27  ;;  %v219_v2 = vand.u32 3, %v111_v27 }
  0x3b   :  { %v487_v44 = vmin.u32 %v88_v48, %v86_v46  ;;  %v314_v52 = vshrl.u32 %v313_v50, 30  ;;  %v116_v34 = vand.u32 3, %v115_v32  ;;  %vm224_vm3 = vcmp.eq.s32.totalorder %v219_v2, 2 }
  0x3c   :  { %vm221_vm5 = vcmp.eq.s32.totalorder %v219_v2, 0  ;;  %vm220_vm7 = vcmp.lt.s32.totalorder %v219_v2, 2 }
  0x3d   :  { %v90_v51 = vclz %v487_v44  ;;  %v315_v54 = vshll.u32 %v314_v52, 30  ;;  %v338_v19 = vsub.s32 4, %v314_v52  ;;  %vm121_vm2 = vcmp.eq.s32.totalorder %v116_v34, 2 }
  0x3e   :  { %vm118_vm4 = vcmp.eq.s32.totalorder %v116_v34, 0  ;;  %vm117_vm6 = vcmp.lt.s32.totalorder %v116_v34, 2 }
  0x3f   :  { %v488_v53 = vadd.s32 4294967294, %v90_v51  ;;  %v316_v57 = vsub.s32 %v312_v49, %v315_v54  ;;  %v339_v36 = vsel %vm254_vm0, %v338_v19, %v314_v52 }
  0x40   :  { %v341_v40 = vsel %vm253_vm1, 0, %v339_v36 }
  0x41   :  { %vm489_vm12 = vcmp.lt.s32.totalorder %v488_v53, 0  ;;  %v318_v61 = vsub.s32 0, %v316_v57  ;;  %v449_v52 = vand.u32 3, %v341_v40 }
  0x42   :  { %v93_v56 = vsel %vm489_vm12, 0, %v488_v53 }
  0x43   :  { %v94_v58 = vsub.s32 32, %v93_v56  ;;  %v95_v59 = vshll.u32 %v86_v46, %v93_v56  ;;  %v98_v60 = vsub.s32 4294967266, %v93_v56  ;;  %v501_v5 = vmin.u32 %v318_v61, %v316_v57 }
  0x44   :  { %v345_v46 = vadd.s32 3, %v341_v40  ;;  %vm454_vm9 = vcmp.eq.s32.totalorder %v449_v52, 2  ;;  %vm450_vm12 = vcmp.lt.s32.totalorder %v449_v52, 2 }
  0x45   :  { %v96_v62 = vshrl.u32 %v78_v55, %v94_v58  ;;  %v99_v4 = vadd.s32 127, %v98_v60  ;;  %v320_v9 = vclz %v501_v5 }
  0x46   :  { %v346_v55 = vand.u32 3, %v345_v46 }
  0x47   :  { %v97_v7 = vor.u32 %v96_v62, %v95_v59  ;;  %v100_v8 = vshll.u32 %v99_v4, 23  ;;  %v502_v12 = vadd.s32 4294967294, %v320_v9 }
  0x48   :  { %vm351_vm10 = vcmp.eq.s32.totalorder %v346_v55, 2  ;;  %vm348_vm11 = vcmp.eq.s32.totalorder %v346_v55, 0 }
  0x49   :  { %v101_v10 = vor.u32 4788187, %v100_v8  ;;  %v104_v11 = vcvt.s32.f32 %v97_v7  ;;  %vm503_vm13 = vcmp.lt.s32.totalorder %v502_v12, 0 }
  0x4a   :  { %v323_v16 = vsel %vm503_vm13, 0, %v502_v12  ;;  %vm451_vm13 = vcmp.eq.s32.totalorder %v449_v52, 0 }
  0x4b   :  { %v102_v14 = vand.u32 2147483647, %v101_v10  ;;  %v324_v17 = vsub.s32 32, %v323_v16  ;;  %v325_v20 = vshll.u32 %v316_v57, %v323_v16  ;;  %v328_v21 = vsub.s32 4294967266, %v323_v16 }
  0x4d   :  { %v105_v1 = vmul.f32 %v104_v11, %v102_v14  ;;  %v326_v23 = vshrl.u32 %v308_v63, %v324_v17  ;;  %v329_v24 = vadd.s32 127, %v328_v21 }
  0x4f   :  { %v106_v18 = vxor.u32 2147483648, %v105_v1  ;;  %v327_v28 = vor.u32 %v326_v23, %v325_v20  ;;  %v330_v29 = vshll.u32 %v329_v24, 23 }
  0x51   :  { %v107_v25 = vsel %vm24_vm14, %v106_v18, %v105_v1  ;;  %v331_v30 = vor.u32 4788187, %v330_v29  ;;  %v334_v31 = vcvt.s32.f32 %v327_v28  ;;  %vm347_vm14 = vcmp.lt.s32.totalorder %v346_v55, 2 }
  0x52   :  { %v110_v26 = vsel %vm23_vm15, %v590_v0, %v107_v25  ;;  %vm344_vm15 = vweird.f32 %v599_v3 }
  0x53   :  { %529 = vcosq.f32 %v110_v26  ;;  %v332_v13 = vand.u32 2147483647, %v331_v30 }
  0x54   :  { %531 = vsinq.f32 %v110_v26 }
  0x55   :  { %v335_v33 = vmul.f32 %v334_v31, %v332_v13 }
  0x57   :  { %v336_v35 = vxor.u32 2147483648, %v335_v33 }
  0x59   :  { %v337_v37 = vsel %vm254_vm0, %v336_v35, %v335_v33 }
  0x5a   :  { %v340_v39 = vsel %vm253_vm1, %v599_v3, %v337_v37 }
  0x5b   :  { %533 = vcosq.f32 %v340_v39 }
  0x5c   :  { %535 = vsinq.f32 %v340_v39 }
  0x5d   :  { %v530_v38 = vpop.eup %529 }
  0x5e   :  { %v532_v41 = vpop.eup %531  ;;  %v122_v42 = vxor.u32 2147483648, %v530_v38 }
  0x5f   :  { %v119_v43 = vxor.u32 2147483648, %v532_v41 }
  0x60   :  { %v123_v6 = vsel %vm121_vm2, %v122_v42, %v532_v41  ;;  %v226_v45 = vsel %vm224_vm3, %v122_v42, %v532_v41 }
  0x61   :  { %v120_v47 = vsel %vm118_vm4, %v530_v38, %v119_v43  ;;  %v223_v48 = vsel %vm221_vm5, %v530_v38, %v119_v43 }
  0x62   :  { %v124_v49 = vsel %vm117_vm6, %v120_v47, %v123_v6  ;;  %v227_v44 = vsel %vm220_vm7, %v223_v48, %v226_v45 }
  0x63   :  { %v125_v50 = vsel %vm114_vm8, nan, %v124_v49  ;;  %v228_v51 = vsel %vm114_vm8, nan, %v227_v44 }
  0x64   :  { %494 = vst [vmem:[%s701_s1 + $0x4] sm:$0x7] %v125_v50  ;;  %v233_v53 = vmul.f32 2.0, %v125_v50  ;;  %v236_v54 = vmul.f32 %v125_v50, %v125_v50  ;;  %495 = vst [vmem:[%s701_s1 + $0x8] sm:$0x7] %v228_v51  ;;  %v235_v0 = vmul.f32 %v228_v51, %v228_v51 }
  0x65   :  { %v534_v58 = vpop.eup %533 }
  0x66   :  { %v234_v56 = vmul.f32 %v233_v53, %v228_v51  ;;  %v237_v57 = vsub.f32 %v235_v0, %v236_v54  ;;  %v536_v62 = vpop.eup %535  ;;  %v352_v4 = vxor.u32 2147483648, %v534_v58 }
  0x67   :  { %v349_v8 = vxor.u32 2147483648, %v536_v62 }
  0x68   :  { %496 = vst [vmem:[%s701_s1 + $0xc] sm:$0x7] %v234_v56  ;;  %497 = vst [vmem:[%s701_s1 + $0x10] sm:$0x7] %v237_v57  ;;  %v242_v59 = vmul.f32 2.0, %v234_v56  ;;  %v244_v60 = vmul.f32 %v237_v57, %v237_v57  ;;  %v245_v61 = vmul.f32 %v234_v56, %v234_v56  ;;  %v353_v9 = vsel %vm351_vm10, %v352_v4, %v536_v62 }
  0x69   :  { %v456_v10 = vsel %vm454_vm9, %v352_v4, %v536_v62  ;;  %v350_v11 = vsel %vm348_vm11, %v534_v58, %v349_v8  ;;  %v453_v12 = vsel %vm451_vm13, %v534_v58, %v349_v8 }
  0x6a   :  { %v243_v5 = vmul.f32 %v242_v59, %v237_v57  ;;  %v246_v7 = vsub.f32 %v244_v60, %v245_v61  ;;  %v354_v14 = vsel %vm347_vm14, %v350_v11, %v353_v9  ;;  %v457_v15 = vsel %vm450_vm12, %v453_v12, %v456_v10 }
  0x6b   :  { %v355_v63 = vsel %vm344_vm15, nan, %v354_v14  ;;  %v458_v1 = vsel %vm344_vm15, nan, %v457_v15 }
  0x6c   :  { %498 = vst [vmem:[%s701_s1 + $0x14] sm:$0x7] %v243_v5  ;;  %499 = vst [vmem:[%s701_s1 + $0x18] sm:$0x7] %v246_v7  ;;  %v463_v3 = vmul.f32 2.0, %v355_v63  ;;  %v466_v16 = vmul.f32 %v355_v63, %v355_v63  ;;  %v465_v17 = vmul.f32 %v458_v1, %v458_v1 }
  0x6d   :  { %508 = vst [vmem:[%s701_s1 + $0x1c] sm:$0x7] %v355_v63  ;;  %509 = vst [vmem:[%s701_s1 + $0x20] sm:$0x7] %v458_v1 }
  0x6e   :  { %v464_v20 = vmul.f32 %v463_v3, %v458_v1  ;;  %v467_v21 = vsub.f32 %v465_v17, %v466_v16 }
  0x70   :  { %510 = vst [vmem:[%s701_s1 + $0x24] sm:$0x7] %v464_v20  ;;  %511 = vst [vmem:[%s701_s1 + $0x28] sm:$0x7] %v467_v21  ;;  %v472_v18 = vmul.f32 2.0, %v464_v20  ;;  %v474_v22 = vmul.f32 %v467_v21, %v467_v21  ;;  %v475_v23 = vmul.f32 %v464_v20, %v464_v20 }
  0x72   :  { %v473_v24 = vmul.f32 %v472_v18, %v467_v21  ;;  %v476_v25 = vsub.f32 %v474_v22, %v475_v23 }
  0x74   :  { %512 = vst [vmem:[%s701_s1 + $0x2c] sm:$0x7] %v473_v24  ;;  %513 = vst [vmem:[%s701_s1 + $0x30] sm:$0x7] %v476_v25 }
  0x75   :  { %485 = vsyncpa [#allocation3], 1 }

</bundles_post_ra>
